<compile_context>
chip_gen: v6e
topology: v6e:2x2x1
jax: 0.10.0
libtpu: 0.0.40
codegen_flags: <defaults>
</compile_context>

<pallas_src>
import functools

import jax
import jax.numpy as jnp
from jax import lax
from jax.experimental import pallas as pl
from jax.experimental.pallas import tpu as pltpu

# Plain Python float (NOT a jnp array) so the kernel does not capture a constant.
_NEG_BIG = -1.0e30   # finite "-inf"; safe together with max-subtraction


def _nt_xent_lse_kernel(q_ref, k_ref, out_ref, m_scr, l_scr, *, tm, tn, exp_dtype):
    """Per-row logsumexp over non-self similarity logits (online / flash-style).

    q_ref: (tm, D) bf16/f32, rows pre-normalized and pre-scaled by 1/temperature.
    k_ref: (tn, D) bf16/f32, rows pre-normalized.
    out_ref: (tm, 1) f32 per-row LSE (written at the last column step).
    """
    r = pl.program_id(0)
    c = pl.program_id(1)
    num_c = pl.num_programs(1)

    @pl.when(c == 0)
    def _init():
        m_scr[...] = jnp.full_like(m_scr, _NEG_BIG)
        l_scr[...] = jnp.zeros_like(l_scr)

    # Gram tile on the MXU: contract on D of both operands (no transposed copy).
    # Operands are pre-normalized (1/T folded into q), so this IS the logits tile.
    s = lax.dot_general(
        q_ref[...], k_ref[...],
        dimension_numbers=(((1,), (1,)), ((), ())),
        preferred_element_type=jnp.float32)                   # (tm, tn), f32

    def accumulate(s_tile):
        # Online logsumexp update over the column blocks.
        m_prev = m_scr[...]
        m_new = jnp.maximum(m_prev, jnp.max(s_tile, axis=-1, keepdims=True))
        alpha = jnp.exp(m_prev - m_new)                       # (tm,1), keep f32
        # Big (tm,tn) exp: bf16 on chips with a bf16 EUP, f32 otherwise; the
        # row-sum accumulates in f32 either way.
        p = jnp.exp((s_tile - m_new).astype(exp_dtype))
        l_scr[...] = alpha * l_scr[...] + jnp.sum(
            p, axis=-1, keepdims=True, dtype=jnp.float32)
        m_scr[...] = m_new

    # Only mask the self-similarity on tiles that intersect the diagonal.
    row0 = r * tm
    col0 = c * tn
    on_diag = jnp.logical_and(row0 < col0 + tn, col0 < row0 + tm)

    @pl.when(on_diag)
    def _():
        rows = row0 + lax.broadcasted_iota(jnp.int32, (tm, tn), 0)
        cols = col0 + lax.broadcasted_iota(jnp.int32, (tm, tn), 1)
        accumulate(jnp.where(rows == cols, _NEG_BIG, s))

    @pl.when(jnp.logical_not(on_diag))
    def _():
        accumulate(s)

    # Finalize: per-row LSE over all non-self logits.
    @pl.when(c == num_c - 1)
    def _finalize():
        out_ref[...] = m_scr[...] + jnp.log(l_scr[...])


def _device_kind():
    try:
        return jax.devices()[0].device_kind.lower()
    except Exception:  # pragma: no cover - e.g. no devices in an odd env
        return ""


def _pick_block(full, target, preferred_align, min_align=8):
    """Largest divisor of `full` that is <= target and a multiple of the
    preferred alignment (falling back to min_align, then to `full` itself)."""
    limit = min(target, full)
    for align in (preferred_align, min_align):
        best = 0
        b = align
        while b <= limit:
            if full % b == 0:
                best = b
            b += align
        if best:
            return best
    return full  # full-extent block is always a legal BlockSpec


def nt_xent_loss(z_i, z_j, temperature, *, block_rows=512, block_cols=1024,
                 matmul_dtype=jnp.bfloat16, exp_dtype=None):
    """Pallas-backed NT-Xent loss.  z_i, z_j: (N, D) float arrays."""
    assert z_i.shape == z_j.shape and z_i.ndim == 2
    n, d = z_i.shape
    m = 2 * n
    assert n % 8 == 0, "batch size must be a multiple of 8 for TPU tiling"

    kind = _device_kind()
    if exp_dtype is None:
        # bf16 EUP exists on v6e / v7x; v5e (and CPU interpret) stays f32.
        exp_dtype = jnp.bfloat16 if ("v6" in kind or "v7" in kind) else jnp.float32

    inv_temp = jnp.float32(1.0 / temperature)

    # --- wrapper-side prep (one O(M*D) pass, fused by XLA with the concat) ---
    p = jnp.concatenate([z_i, z_j], axis=0).astype(jnp.float32)       # (M, D)
    norm = jnp.sqrt(jnp.sum(p * p, axis=-1, keepdims=True))
    p_hat = p / jnp.maximum(norm, 1e-8)                               # unit rows, f32

    # Positive logits: sim[a, (a+N) mod M] / T  (roll by N == roll by -N mod 2N).
    pos = jnp.sum(p_hat * jnp.roll(p_hat, n, axis=0), axis=-1) * inv_temp   # (M,)

    # Row operand carries 1/temperature; column operand is just normalized.
    q_op = (p_hat * inv_temp).astype(matmul_dtype)                    # (M, D)
    k_op = p_hat.astype(matmul_dtype)                                 # (M, D)

    # --- tile selection ---
    tm = _pick_block(m, block_rows, preferred_align=16)   # sublane packing (bf16)
    tn = _pick_block(m, block_cols, preferred_align=128)  # lane-dense s tile
    num_r = m // tm
    num_c = m // tn

    # v7x megacore: prefer an even stripe count so the "parallel" row axis
    # splits evenly across the two TensorCores.
    if "v7" in kind and num_r > 1 and num_r % 2 == 1 and tm % 16 == 0:
        tm //= 2
        num_r = m // tm

    itemsize = jnp.dtype(matmul_dtype).itemsize
    kernel = functools.partial(_nt_xent_lse_kernel, tm=tm, tn=tn, exp_dtype=exp_dtype)

    # TODO(synk): on v5e, pipeline_mode=pl.Buffered(3) on the column stream can
    # hide DMA latency further if profiling shows it exposed.
    lse = pl.pallas_call(
        kernel,
        out_shape=jax.ShapeDtypeStruct((m, 1), jnp.float32),
        grid_spec=pltpu.PrefetchScalarGridSpec(
            num_scalar_prefetch=0,
            grid=(num_r, num_c),
            in_specs=[
                pl.BlockSpec((tm, d), lambda r, c: (r, 0)),   # row block (revisited, no re-DMA)
                pl.BlockSpec((tn, d), lambda r, c: (c, 0)),   # column block (dominant stream)
            ],
            out_specs=pl.BlockSpec((tm, 1), lambda r, c: (r, 0)),
            scratch_shapes=[pltpu.VMEM((tm, 1), jnp.float32),   # running max
                            pltpu.VMEM((tm, 1), jnp.float32)],  # running sum-exp
        ),
        compiler_params=pltpu.CompilerParams(
            dimension_semantics=("parallel", "arbitrary"),
            vmem_limit_bytes=48 * 1024 * 1024),
        cost_estimate=pl.CostEstimate(
            flops=2 * m * m * d,
            transcendentals=m * m,
            bytes_accessed=m * d * itemsize + num_r * m * d * itemsize + m * 4),
    )(q_op, k_op)

    return jnp.sum(lse[:, 0] - pos) / jnp.float32(m)


def _nt_xent_ref(z_i, z_j, temperature):
    """Pure-JAX reference mirroring the PyTorch module."""
    p = jnp.concatenate([z_i, z_j], axis=0)
    n = z_i.shape[0]
    m = 2 * n
    norm = jnp.maximum(jnp.linalg.norm(p, axis=-1, keepdims=True), 1e-8)
    sim = (p @ p.T) / (norm * norm.T) / temperature
    sim_no_diag = jnp.where(jnp.eye(m, dtype=bool), -jnp.inf, sim)
    lse = jax.scipy.special.logsumexp(sim_no_diag, axis=1)
    pos = sim[jnp.arange(m), (jnp.arange(m) + n) % m]
    return jnp.sum(lse - pos) / m


if __name__ == "__main__":
    # Small deterministic inputs consistent with the module's forward:
    # batch_size = 8, hidden = 32, temperature = 0.5.
    batch_size = 8
    hidden = 32
    temperature = 0.5

    key = jax.random.PRNGKey(0)
    k_i, k_j = jax.random.split(key)
    z_i = jax.random.normal(k_i, (batch_size, hidden), dtype=jnp.float32)
    z_j = jax.random.normal(k_j, (batch_size, hidden), dtype=jnp.float32)

    loss_fn = jax.jit(functools.partial(nt_xent_loss, temperature=temperature))
    loss = loss_fn(z_i, z_j)
    jax.block_until_ready(loss)

    ref = _nt_xent_ref(z_i, z_j, temperature)
    # Tolerance absorbs bf16 MXU operands / bf16 exp; the LSE math is f32.
    assert jnp.allclose(loss, ref, rtol=5e-2, atol=5e-2), (float(loss), float(ref))
    print("KERNEL_OK")
</pallas_src>

<mosaic_0001>
module attributes {stable_mosaic.version = 11 : i64} {
  func.func @_nt_xent_lse_kernel(%arg0: i32, %arg1: i32, %arg2: memref<16x32xbf16, #tpu.memory_space<vmem>>, %arg3: memref<16x32xbf16, #tpu.memory_space<vmem>>, %arg4: memref<16x1xf32, #tpu.memory_space<vmem>>, %arg5: memref<16x1xf32, #tpu.memory_space<vmem>>, %arg6: memref<16x1xf32, #tpu.memory_space<vmem>>) attributes {dimension_semantics = [#tpu.dimension_semantics<parallel>, #tpu.dimension_semantics<arbitrary>], iteration_bounds = array<i64: 1, 1>, scalar_prefetch = 0 : i64, scratch_operands = 2 : i64, tpu.core_type = #tpu.core_type<tc>, window_params = [{transform_indices = @transform_0, window_bounds = array<i64: 16, 32>}, {transform_indices = @transform_1, window_bounds = array<i64: 16, 32>}, {transform_indices = @transform_2, window_bounds = array<i64: 16, 1>}]} {
    %c0_i32 = arith.constant 0 : i32
    %0 = arith.cmpi eq, %arg1, %c0_i32 : i32
    %1 = arith.extui %0 : i1 to i32
    %c0_i32_0 = arith.constant 0 : i32
    %2 = arith.cmpi ne, %1, %c0_i32_0 : i32
    scf.if %2 {
      %cst_11 = arith.constant -1.000000e+30 : f32
      %21 = vector.broadcast %cst_11 : f32 to vector<16x1xf32>
      %c0_12 = arith.constant 0 : index
      %c0_13 = arith.constant 0 : index
      %22 = vector.load %arg5[%c0_12, %c0_13] : memref<16x1xf32, #tpu.memory_space<vmem>>, vector<16x1xf32>
      tpu.vector_store %arg5[%c0_12, %c0_13], %21 {strides = array<i32>} : memref<16x1xf32, #tpu.memory_space<vmem>>, vector<16x1xf32>,
      %cst_14 = arith.constant 0.000000e+00 : f32
      %23 = vector.broadcast %cst_14 : f32 to vector<16x1xf32>
      %c0_15 = arith.constant 0 : index
      %c0_16 = arith.constant 0 : index
      %24 = vector.load %arg6[%c0_15, %c0_16] : memref<16x1xf32, #tpu.memory_space<vmem>>, vector<16x1xf32>
      tpu.vector_store %arg6[%c0_15, %c0_16], %23 {strides = array<i32>} : memref<16x1xf32, #tpu.memory_space<vmem>>, vector<16x1xf32>,
    } else {
    }
    %c0 = arith.constant 0 : index
    %c0_1 = arith.constant 0 : index
    %3 = vector.load %arg2[%c0, %c0_1] : memref<16x32xbf16, #tpu.memory_space<vmem>>, vector<16x32xbf16>
    %c0_2 = arith.constant 0 : index
    %c0_3 = arith.constant 0 : index
    %4 = vector.load %arg3[%c0_2, %c0_3] : memref<16x32xbf16, #tpu.memory_space<vmem>>, vector<16x32xbf16>
    %cst = arith.constant dense<0.000000e+00> : vector<16x16xf32>
    %5 = tpu.matmul %3, %4, %cst {dimension_numbers = #tpu.dot_dimension_numbers<[1], [1], [0], [0], [0, 0, 1, 0], [], []>} : vector<16x32xbf16>, vector<16x32xbf16>, vector<16x16xf32> -> vector<16x16xf32>
    %c16_i32 = arith.constant 16 : i32
    %6 = arith.muli %arg0, %c16_i32 : i32
    %c16_i32_4 = arith.constant 16 : i32
    %7 = arith.muli %arg1, %c16_i32_4 : i32
    %c16_i32_5 = arith.constant 16 : i32
    %8 = arith.addi %7, %c16_i32_5 : i32
    %9 = arith.cmpi slt, %6, %8 : i32
    %c16_i32_6 = arith.constant 16 : i32
    %10 = arith.addi %6, %c16_i32_6 : i32
    %11 = arith.cmpi slt, %7, %10 : i32
    %12 = arith.andi %9, %11 : i1
    %13 = arith.extui %12 : i1 to i32
    %c0_i32_7 = arith.constant 0 : i32
    %14 = arith.cmpi ne, %13, %c0_i32_7 : i32
    scf.if %14 {
      %21 = tpu.iota {dimensions = array<i32: 0>} : vector<16x16xi32>
      %22 = vector.broadcast %6 : i32 to vector<16x16xi32>
      %23 = arith.addi %22, %21 : vector<16x16xi32>
      %24 = tpu.iota {dimensions = array<i32: 1>} : vector<16x16xi32>
      %25 = vector.broadcast %7 : i32 to vector<16x16xi32>
      %26 = arith.addi %25, %24 : vector<16x16xi32>
      %27 = arith.cmpi eq, %23, %26 : vector<16x16xi32>
      %cst_11 = arith.constant -1.000000e+30 : f32
      %28 = vector.broadcast %cst_11 : f32 to vector<16x16xf32>
      %29 = arith.select %27, %28, %5 : vector<16x16xi1>, vector<16x16xf32>
      %c0_12 = arith.constant 0 : index
      %c0_13 = arith.constant 0 : index
      %30 = vector.load %arg5[%c0_12, %c0_13] : memref<16x1xf32, #tpu.memory_space<vmem>>, vector<16x1xf32>
      %cst_14 = arith.constant dense<0xFF800000> : vector<16xf32>
      %31 = vector.multi_reduction <maximumf>, %29, %cst_14 [1] : vector<16x16xf32> to vector<16xf32>
      %32 = vector.shape_cast %31 : vector<16xf32> to vector<16x1xf32>
      %33 = arith.maximumf %30, %32 : vector<16x1xf32>
      %34 = arith.subf %30, %33 : vector<16x1xf32>
      %35 = math.exp %34 : vector<16x1xf32>
      %36 = vector.broadcast %33 : vector<16x1xf32> to vector<16x16xf32>
      %37 = arith.subf %29, %36 : vector<16x16xf32>
      %38 = math.exp %37 : vector<16x16xf32>
      %c0_15 = arith.constant 0 : index
      %c0_16 = arith.constant 0 : index
      %39 = vector.load %arg6[%c0_15, %c0_16] : memref<16x1xf32, #tpu.memory_space<vmem>>, vector<16x1xf32>
      %40 = arith.mulf %35, %39 : vector<16x1xf32>
      %cst_17 = arith.constant dense<0.000000e+00> : vector<16xf32>
      %41 = vector.multi_reduction <add>, %38, %cst_17 [1] : vector<16x16xf32> to vector<16xf32>
      %42 = vector.shape_cast %41 : vector<16xf32> to vector<16x1xf32>
      %43 = arith.addf %40, %42 : vector<16x1xf32>
      %c0_18 = arith.constant 0 : index
      %c0_19 = arith.constant 0 : index
      %44 = vector.load %arg6[%c0_18, %c0_19] : memref<16x1xf32, #tpu.memory_space<vmem>>, vector<16x1xf32>
      tpu.vector_store %arg6[%c0_18, %c0_19], %43 {strides = array<i32>} : memref<16x1xf32, #tpu.memory_space<vmem>>, vector<16x1xf32>,
      %c0_20 = arith.constant 0 : index
      %c0_21 = arith.constant 0 : index
      %45 = vector.load %arg5[%c0_20, %c0_21] : memref<16x1xf32, #tpu.memory_space<vmem>>, vector<16x1xf32>
      tpu.vector_store %arg5[%c0_20, %c0_21], %33 {strides = array<i32>} : memref<16x1xf32, #tpu.memory_space<vmem>>, vector<16x1xf32>,
    } else {
    }
    %true = arith.constant true
    %15 = arith.xori %12, %true : i1
    %16 = arith.extui %15 : i1 to i32
    %c0_i32_8 = arith.constant 0 : i32
    %17 = arith.cmpi ne, %16, %c0_i32_8 : i32
    scf.if %17 {
      %c0_11 = arith.constant 0 : index
      %c0_12 = arith.constant 0 : index
      %21 = vector.load %arg5[%c0_11, %c0_12] : memref<16x1xf32, #tpu.memory_space<vmem>>, vector<16x1xf32>
      %cst_13 = arith.constant dense<0xFF800000> : vector<16xf32>
      %22 = vector.multi_reduction <maximumf>, %5, %cst_13 [1] : vector<16x16xf32> to vector<16xf32>
      %23 = vector.shape_cast %22 : vector<16xf32> to vector<16x1xf32>
      %24 = arith.maximumf %21, %23 : vector<16x1xf32>
      %25 = arith.subf %21, %24 : vector<16x1xf32>
      %26 = math.exp %25 : vector<16x1xf32>
      %27 = vector.broadcast %24 : vector<16x1xf32> to vector<16x16xf32>
      %28 = arith.subf %5, %27 : vector<16x16xf32>
      %29 = math.exp %28 : vector<16x16xf32>
      %c0_14 = arith.constant 0 : index
      %c0_15 = arith.constant 0 : index
      %30 = vector.load %arg6[%c0_14, %c0_15] : memref<16x1xf32, #tpu.memory_space<vmem>>, vector<16x1xf32>
      %31 = arith.mulf %26, %30 : vector<16x1xf32>
      %cst_16 = arith.constant dense<0.000000e+00> : vector<16xf32>
      %32 = vector.multi_reduction <add>, %29, %cst_16 [1] : vector<16x16xf32> to vector<16xf32>
      %33 = vector.shape_cast %32 : vector<16xf32> to vector<16x1xf32>
      %34 = arith.addf %31, %33 : vector<16x1xf32>
      %c0_17 = arith.constant 0 : index
      %c0_18 = arith.constant 0 : index
      %35 = vector.load %arg6[%c0_17, %c0_18] : memref<16x1xf32, #tpu.memory_space<vmem>>, vector<16x1xf32>
      tpu.vector_store %arg6[%c0_17, %c0_18], %34 {strides = array<i32>} : memref<16x1xf32, #tpu.memory_space<vmem>>, vector<16x1xf32>,
      %c0_19 = arith.constant 0 : index
      %c0_20 = arith.constant 0 : index
      %36 = vector.load %arg5[%c0_19, %c0_20] : memref<16x1xf32, #tpu.memory_space<vmem>>, vector<16x1xf32>
      tpu.vector_store %arg5[%c0_19, %c0_20], %24 {strides = array<i32>} : memref<16x1xf32, #tpu.memory_space<vmem>>, vector<16x1xf32>,
    } else {
    }
    %c0_i32_9 = arith.constant 0 : i32
    %18 = arith.cmpi eq, %arg1, %c0_i32_9 : i32
    %19 = arith.extui %18 : i1 to i32
    %c0_i32_10 = arith.constant 0 : i32
    %20 = arith.cmpi ne, %19, %c0_i32_10 : i32
    scf.if %20 {
      %c0_11 = arith.constant 0 : index
      %c0_12 = arith.constant 0 : index
      %21 = vector.load %arg5[%c0_11, %c0_12] : memref<16x1xf32, #tpu.memory_space<vmem>>, vector<16x1xf32>
      %c0_13 = arith.constant 0 : index
      %c0_14 = arith.constant 0 : index
      %22 = vector.load %arg6[%c0_13, %c0_14] : memref<16x1xf32, #tpu.memory_space<vmem>>, vector<16x1xf32>
      %23 = math.log %22 : vector<16x1xf32>
      %24 = arith.addf %21, %23 : vector<16x1xf32>
      %c0_15 = arith.constant 0 : index
      %c0_16 = arith.constant 0 : index
      %25 = vector.load %arg4[%c0_15, %c0_16] : memref<16x1xf32, #tpu.memory_space<vmem>>, vector<16x1xf32>
      tpu.vector_store %arg4[%c0_15, %c0_16], %24 {strides = array<i32>} : memref<16x1xf32, #tpu.memory_space<vmem>>, vector<16x1xf32>,
    } else {
    }
    return
  }
  func.func @transform_0(%arg0: i32, %arg1: i32) -> (i32, i32) {
    %c0_i32 = arith.constant 0 : i32
    %c0_i32_0 = arith.constant 0 : i32
    return %arg0, %c0_i32 : i32, i32
  }
  func.func @transform_1(%arg0: i32, %arg1: i32) -> (i32, i32) {
    %c0_i32 = arith.constant 0 : i32
    %c0_i32_0 = arith.constant 0 : i32
    return %arg1, %c0_i32 : i32, i32
  }
  func.func @transform_2(%arg0: i32, %arg1: i32) -> (i32, i32) {
    %c0_i32 = arith.constant 0 : i32
    %c0_i32_0 = arith.constant 0 : i32
    return %arg0, %c0_i32 : i32, i32
  }
}

</mosaic_0001>

<bundles_post_ra>
// kernel: nt_xent_loss.1
= control target key start
LH: loop header
LB: loop body
LE: loop exit
PB: predicated region body
PF: predicated region fallthrough
CT: control target
= control target key end

     0   :  { %vm16_vm0 = vcmask 7168   ;;  %vm35_vm1 = vcmask 261120   ;;  %v261_v0 = vmov 0.0   ;;  %vm262_vm2 = vmmov 0   ;;  %s306_s1 = inlined_call_operand.vmem [shape: bf16[16,32], index: 1, kind: input, shape index: {}]   ;;  %s307_s0 = inlined_call_operand.vmem [shape: bf16[16,32], index: 0, kind: input, shape index: {}]   ;;  %s308_s2 = inlined_call_operand.vmem [shape: f32[16,1], index: 2, kind: output, shape index: {}]  }
   0x1   :  { %19 = vst.msk [vmem:[#allocation3] sm:$0xff] %vm16_vm0, %v261_v0  ;;  %20 = vst.msk [vmem:[#allocation3 + $0x8] sm:$0xff] %vm16_vm0, %v261_v0  ;;  %235 = vmatprep.subr.bf16.mxu0 %v261_v0  ;;  %v247_v1 = vld [vmem:[%s306_s1] sm:$0xff]   ;;  %237 = vmatprep.mubr.msk.bf16.mxu0 %vm262_vm2, %v261_v0  ;;  %v263_v4 = vmov -1e+30   ;;  %v93_v5 = vlaneseq  ;;  %vm109_vm4 = vcmask 130048  }
   0x2   :  { %v40_v2 = vsel %vm35_vm1, %v247_v1, 0  ;;  %v248_v3 = vld [vmem:[%s307_s0] sm:$0xff]   ;;  %17 = vst.msk [vmem:[#allocation2] sm:$0xff] %vm16_vm0, %v263_v4  ;;  %18 = vst.msk [vmem:[#allocation2 + $0x8] sm:$0xff] %vm16_vm0, %v263_v4  ;;  %v264_v17 = vmov 0  }
   0x3   :  { %236 = vmatpush3.bf16.xpose.msra.mxu0 %v40_v2  ;;  %v94_v6 = vshrl.u32 %v93_v5, 7  ;;  %v100_v7 = vand.u32 127, %v93_v5  ;;  %245 = vset.pattern.permute.xlu1 %v264_v17 }
   0x4   :  { %246 = vset.pattern.permute.xlu0 %v264_v17 }
   0x5   :  { %vm103_vm3 = vcmp.eq.s32.totalorder %v94_v6, %v100_v7  ;;  %v95_v8 = vadd.s32 8, %v94_v6 }
   0x7   :  { %vm104_vm5 = vcmp.eq.s32.totalorder %v95_v8, %v100_v7 }
   0x8   :  { %v140_v39 = vld [vmem:[#allocation3] sm:$0xff]  ;;  %v141_v43 = vld [vmem:[#allocation3 + $0x8] sm:$0xff] }
   0x9   :  { %v107_v18 = vld [vmem:[#allocation2] sm:$0xff]  ;;  %v108_v21 = vld [vmem:[#allocation2 + $0x8] sm:$0xff] }
   0xa   :  { %238 = vmatmul.mubr.msk.bf16.vlgmr.msra.gmra.mxu0 %vm35_vm1, %v248_v3 }
  0xca   :  { %v76_v9 = vpop.f32.mrf.mxu0 }
  0xcb   :  { %v105_v10 = vsel %vm103_vm3, -1e+30, %v76_v9 }
  0xcc   :  { %v239_v11 = vpop.f32.mrf.mxu0  ;;  %v110_v12 = vsel %vm109_vm4, %v105_v10, -inf }
  0xcd   :  { %111 = vmax.xlane.f32.xlu0 %v110_v12 }
  0xce   :  { %v79_v13 = vpop.f32.mrf.mxu0 }
  0xcf   :  { %v106_v14 = vsel %vm104_vm5, -1e+30, %v79_v13 }
  0xd0   :  { %v240_v15 = vpop.f32.mrf.mxu0  ;;  %v113_v16 = vsel %vm109_vm4, %v106_v14, -inf }
  0xd1   :  { %114 = vmax.xlane.f32.xlu0 %v113_v16 }
 0x156   :  { %v112_v19 = vpop.xlane.xlu0 %111 }
 0x157   :  { %v116_v20 = vmax.f32 %v107_v18, %v112_v19 }
 0x159   :  { %v118_v22 = vsub.f32 %v107_v18, %v116_v20  ;;  %155 = vst.msk [vmem:[#allocation2] sm:$0xff] %vm16_vm0, %v116_v20  ;;  %126 = vperm.xlu1 %245, %v116_v20  }
 0x15a   :  { %v115_v23 = vpop.xlane.xlu0 %114 }
 0x15b   :  { %v117_v24 = vmax.f32 %v108_v21, %v115_v23  ;;  %v120_v36 = vmul.f32 1.442695, %v118_v22 }
 0x15d   :  { %v119_v25 = vsub.f32 %v108_v21, %v117_v24  ;;  %156 = vst.msk [vmem:[#allocation2 + $0x8] sm:$0xff] %vm16_vm0, %v117_v24  ;;  %131 = vperm.xlu1 %245, %v117_v24  }
 0x15f   :  { %v122_v37 = vmul.f32 1.442695, %v119_v25 }
 0x160   :  { %v213_v52 = vld [vmem:[#allocation2] sm:$0xff] }
 0x164   :  { %v214_v56 = vld [vmem:[#allocation2 + $0x8] sm:$0xff] }
 0x1d4   :  { %v127_v26 = vpop.permute.xlu1 %126 }
 0x1d5   :  { %v134_v27 = vsub.f32 %v105_v10, %v127_v26 }
 0x1d7   :  { %v136_v28 = vmul.f32 1.442695, %v134_v27 }
 0x1d8   :  { %v132_v29 = vpop.permute.xlu1 %131 }
 0x1d9   :  { %249 = vpow2.f32 %v136_v28  ;;  %v135_v30 = vsub.f32 %v106_v14, %v132_v29 }
 0x1db   :  { %v138_v31 = vmul.f32 1.442695, %v135_v30 }
 0x1dd   :  { %251 = vpow2.f32 %v138_v31 }
 0x1de   :  { %253 = vpow2.f32 %v120_v36 }
 0x1df   :  { %255 = vpow2.f32 %v122_v37 }
 0x1e6   :  { %v250_v32 = vpop.eup %249 }
 0x1e7   :  { %v144_v33 = vsel %vm109_vm4, %v250_v32, 0.0 }
 0x1e8   :  { %145 = vadd.xlane.f32.xlu0 %v144_v33 }
 0x1ea   :  { %v252_v34 = vpop.eup %251 }
 0x1eb   :  { %v147_v35 = vsel %vm109_vm4, %v252_v34, 0.0  ;;  %v254_v38 = vpop.eup %253 }
 0x1ec   :  { %148 = vadd.xlane.f32.xlu1 %v147_v35  ;;  %v142_v40 = vmul.f32 %v254_v38, %v140_v39  ;;  %v256_v41 = vpop.eup %255 }
 0x1ed   :  { %v143_v45 = vmul.f32 %v256_v41, %v141_v43 }
 0x271   :  { %v146_v42 = vpop.xlane.xlu0 %145 }
 0x272   :  { %v150_v44 = vadd.f32 %v146_v42, %v142_v40 }
 0x274   :  { %153 = vst.msk [vmem:[#allocation3] sm:$0xff] %vm16_vm0, %v150_v44 }
 0x275   :  { %v149_v46 = vpop.xlane.xlu1 %148 }
 0x276   :  { %v151_v47 = vadd.f32 %v149_v46, %v143_v45 }
 0x278   :  { %154 = vst.msk [vmem:[#allocation3 + $0x8] sm:$0xff] %vm16_vm0, %v151_v47 }
 0x27b   :  { %v215_v48 = vld [vmem:[#allocation3] sm:$0xff] }
 0x27c   :  { %257 = vlog2.f32 %v215_v48 }
 0x27f   :  { %v216_v49 = vld [vmem:[#allocation3 + $0x8] sm:$0xff] }
 0x280   :  { %259 = vlog2.f32 %v216_v49 }
 0x289   :  { %v258_v50 = vpop.eup %257 }
 0x28a   :  { %v218_v51 = vmul.f32 0.6931472, %v258_v50 }
 0x28c   :  { %v221_v53 = vadd.f32 %v218_v51, %v213_v52 }
 0x28d   :  { %v260_v54 = vpop.eup %259 }
 0x28e   :  { %224 = vst.msk [vmem:[%s308_s2] sm:$0xff] %vm16_vm0, %v221_v53  ;;  %v220_v55 = vmul.f32 0.6931472, %v260_v54 }
 0x290   :  { %v222_v57 = vadd.f32 %v220_v55, %v214_v56 }
 0x292   :  { %225 = vst.msk [vmem:[%s308_s2 + $0x8] sm:$0xff] %vm16_vm0, %v222_v57 }

</bundles_post_ra>
